<compile_context>
chip_gen: v7x
topology: tpu7x:2x2x1
jax: 0.10.0
libtpu: 0.0.40
codegen_flags: <defaults>
</compile_context>

<pallas_src>
import functools

import jax
import jax.numpy as jnp
from jax import lax
from jax.experimental import pallas as pl
from jax.experimental.pallas import tpu as pltpu


# --------------------------------------------------------------------------- kernel


def _uninet_level_kernel(s_ref, t_ref, key_ref, out_ref,
                         qbf_ref, dot_ref, rsum_ref, *,
                         inv_temperature: float, margin: float, pad_cols: int):
    """Grid step (b, q, k).

    s_ref   : (1, C, TQ)  student features, query tile (native dtype, resident across k)
    t_ref   : (1, C, TQ)  teacher features, query tile (native dtype, resident across k)
    key_ref : (1, TK, C)  pre-normalized teacher keys, bf16, 1/T folded in
    out_ref : (1, 3, TQ)  row 0: 1-cos, row 1: -log(diag+eps), row 2: relu(margin-diag)
    qbf_ref : (C, TQ)     cached L2-normalized student query tile, bf16
    dot_ref : (1, TQ)     cached f32 cosine dot for this query tile
    rsum_ref: (1, TQ)     running row-sum of exp(sim) over key tiles
    """
    k = pl.program_id(2)
    nk = pl.num_programs(2)

    @pl.when(k == 0)
    def _():
        s = s_ref[0].astype(jnp.float32)      # (C, TQ)
        t = t_ref[0].astype(jnp.float32)      # (C, TQ)
        # F.normalize(p=2, dim=C, eps=1e-12): x * rsqrt(max(sum(x^2), eps^2)).
        sn = s * lax.rsqrt(jnp.maximum(jnp.sum(s * s, axis=0, keepdims=True), 1e-24))
        tn = t * lax.rsqrt(jnp.maximum(jnp.sum(t * t, axis=0, keepdims=True), 1e-24))
        qbf_ref[...] = sn.astype(jnp.bfloat16)
        # cosine_similarity of already-normalized vectors == dot (and 0 for zero rows,
        # matching PyTorch's clamped denominator behaviour).
        dot_ref[...] = jnp.sum(sn * tn, axis=0, keepdims=True)     # (1, TQ)
        rsum_ref[...] = jnp.zeros_like(rsum_ref)

    # (TK, TQ) tile of sim^T.  Keys are already L2-normalized and scaled by 1/T, query
    # is L2-normalized, so |sim| <= 1/T -> exp() cannot overflow without max-subtraction.
    sim_t = jnp.dot(key_ref[0], qbf_ref[...], preferred_element_type=jnp.float32)
    rsum_ref[...] += jnp.sum(jnp.exp(sim_t), axis=0, keepdims=True)

    @pl.when(k == nk - 1)
    def _():
        dot = dot_ref[...]                                         # (1, TQ) f32
        cos_loss = 1.0 - dot
        diag_num = jnp.exp(dot * inv_temperature)                  # exact f32 diagonal
        # Each zero-padded key column contributed exactly exp(0) = 1 to the row sum.
        denom = rsum_ref[...] - float(pad_cols) + 1e-8
        diag = diag_num / denom                                    # exact divide
        out_ref[0, 0:1, :] = cos_loss
        out_ref[0, 1:2, :] = -jnp.log(diag + 1e-8)
        out_ref[0, 2:3, :] = jnp.maximum(margin - diag, 0.0)


# --------------------------------------------------------------------------- planning


def _round_up(x: int, m: int) -> int:
    return ((x + m - 1) // m) * m


def _plan_tiles(l: int, c: int, budget_bytes: int = 40 * 1024 * 1024):
    """Pick (tq, tk, l_pad): 128-multiple tiles, key resident (nk==1) when it fits."""
    tq = 512 if l >= 512 else _round_up(l, 128)
    while True:
        l_pad = _round_up(l, tq)
        cands = sorted({t for t in (l_pad, 2048, 1024, 512, 384, 256, 128)
                        if t <= l_pad and l_pad % t == 0}, reverse=True)
        for tk in cands:
            est = (2 * tk * c * 2          # bf16 key tile, double-buffered
                   + 4 * c * tq * 4        # student + teacher query f32, double-buffered
                   + 2 * 3 * tq * 4        # output block
                   + c * tq * 2            # cached bf16 query scratch
                   + 2 * tq * 4            # dot + row-sum scratches
                   + 2 * tk * tq * 4)      # sim / exp f32 temporaries
            if est <= budget_bytes:
                return tq, tk, l_pad
        if tq <= 128:
            return tq, 128, l_pad          # last resort (enormous C); still valid
        tq = max(128, tq - 128)


def _vmem_limit_bytes() -> int:
    """Scoped-VMEM limit with per-generation headroom (48 MiB on v7x, ~96 MiB on 128-MiB parts)."""
    try:
        cap = int(getattr(pltpu.get_tpu_info(), "vmem_capacity_bytes"))
    except Exception:
        cap = 64 * 1024 * 1024
    return max(48 * 1024 * 1024, min(96 * 1024 * 1024, cap - 16 * 1024 * 1024))


# --------------------------------------------------------------------------- wrapper


def _level_partial_terms(s_ncl, t_ncl, *, temperature: float, margin: float):
    """One feature level.  Inputs (N, C, L) in native dtype.

    Returns (terms, l_pad): terms is (N, 3, L_pad) f32 with rows
    [1-cos, -log(diag+eps), relu(margin-diag)]; columns >= L are padding (ignore).
    """
    n, c, l = s_ncl.shape
    inv_t = 1.0 / float(temperature)
    tq, tk, l_pad = _plan_tiles(l, c)
    pad = l_pad - l
    if pad:
        s_ncl = jnp.pad(s_ncl, ((0, 0), (0, 0), (0, pad)))
        t_ncl = jnp.pad(t_ncl, ((0, 0), (0, 0), (0, pad)))

    # Pre-normalized, 1/T-folded bf16 teacher KEYS in (N, L_pad, C) layout — one cheap
    # XLA pass; zero-padded columns stay exactly zero.
    tf = t_ncl.astype(jnp.float32)
    tnorm = tf * lax.rsqrt(jnp.maximum(jnp.sum(tf * tf, axis=1, keepdims=True), 1e-24))
    key_lc = jnp.transpose((tnorm * inv_t).astype(jnp.bfloat16), (0, 2, 1))

    nq, nk = l_pad // tq, l_pad // tk
    kernel = functools.partial(
        _uninet_level_kernel,
        inv_temperature=inv_t,
        margin=float(margin),
        pad_cols=int(pad),
    )
    terms = pl.pallas_call(
        kernel,
        out_shape=jax.ShapeDtypeStruct((n, 3, l_pad), jnp.float32),
        grid_spec=pltpu.PrefetchScalarGridSpec(
            num_scalar_prefetch=0,
            grid=(n, nq, nk),
            in_specs=[
                pl.BlockSpec((1, c, tq), lambda b, q, k: (b, 0, q)),   # student query tile
                pl.BlockSpec((1, c, tq), lambda b, q, k: (b, 0, q)),   # teacher query tile (f32)
                pl.BlockSpec((1, tk, c), lambda b, q, k: (b, k, 0)),   # bf16 key tile
            ],
            out_specs=pl.BlockSpec((1, 3, tq), lambda b, q, k: (b, 0, q)),
            scratch_shapes=[
                pltpu.VMEM((c, tq), jnp.bfloat16),   # cached normalized student query
                pltpu.VMEM((1, tq), jnp.float32),    # cached cosine dot
                pltpu.VMEM((1, tq), jnp.float32),    # running row-sum
            ],
        ),
        compiler_params=pltpu.CompilerParams(
            dimension_semantics=("parallel", "parallel", "arbitrary"),
            vmem_limit_bytes=_vmem_limit_bytes(),
        ),
    )(s_ncl, t_ncl, key_lc)
    return terms, l_pad


def uninet_loss(
    student_features,
    teacher_features,
    *,
    lambda_weight: float = 0.7,
    temperature: float = 2.0,
    margin: float = 1.0,
):
    """JAX/Pallas equivalent of UniNetLoss.forward with mask=None.

    student_features / teacher_features: lists of NCHW arrays (any float dtype).
    """
    # TODO(synk): masked branch (F.interpolate nearest + boolean indexing over
    # normal/abnormal positions) is not implemented; this covers mask=None only.
    # stop_gradient has no effect on the forward value.
    loss = jnp.float32(0.0)
    for s, t in zip(student_features, teacher_features):
        n, c, h, w = s.shape
        l = h * w
        s_ncl = s.reshape(n, c, l)   # free contiguous reshape, native dtype kept
        t_ncl = t.reshape(n, c, l)

        terms, _ = _level_partial_terms(
            s_ncl, t_ncl, temperature=temperature, margin=margin)
        valid = terms[:, :, :l]                       # drop padded query columns
        denom = jnp.float32(n * l)
        cosine_loss = jnp.sum(valid[:, 0, :]) / denom
        contrastive_loss = jnp.sum(valid[:, 1, :]) / denom
        margin_loss_n = jnp.sum(valid[:, 2, :]) / denom
        margin_loss_a = jnp.float32(0.0)              # mask=None path
        margin_loss = margin_loss_n + margin_loss_a

        loss = (loss + cosine_loss * lambda_weight
                + contrastive_loss * (1.0 - lambda_weight) + margin_loss)
    return loss


# --------------------------------------------------------------------------- reference


def _uninet_loss_reference(student_features, teacher_features, *, lambda_weight=0.7,
                           temperature=2.0, margin=1.0):
    """Pure-JAX f32 reference mirroring the PyTorch math (mask=None)."""
    loss = jnp.float32(0.0)
    for s, t in zip(student_features, teacher_features):
        n, c, h, w = s.shape
        sf = jnp.transpose(s.reshape(n, c, h * w), (0, 2, 1)).astype(jnp.float32)
        tf = jnp.transpose(t.reshape(n, c, h * w), (0, 2, 1)).astype(jnp.float32)
        sf_n = sf / jnp.maximum(jnp.linalg.norm(sf, axis=2, keepdims=True), 1e-12)
        tf_n = tf / jnp.maximum(jnp.linalg.norm(tf, axis=2, keepdims=True), 1e-12)
        dot = jnp.sum(sf_n * tf_n, axis=2)
        denom = jnp.maximum(
            jnp.linalg.norm(sf_n, axis=2) * jnp.linalg.norm(tf_n, axis=2), 1e-8)
        cosine_loss = jnp.mean(1.0 - dot / denom)
        sim = jnp.exp(jnp.einsum("blc,bmc->blm", sf_n, tf_n) / temperature)
        sim = sim / (jnp.sum(sim, axis=2, keepdims=True) + 1e-8)
        diag = jnp.diagonal(sim, axis1=1, axis2=2)
        contrastive_loss = jnp.mean(-jnp.log(diag + 1e-8))
        margin_loss = jnp.mean(jnp.maximum(margin - diag, 0.0))
        loss = (loss + cosine_loss * lambda_weight
                + contrastive_loss * (1 - lambda_weight) + margin_loss)
    return loss


# --------------------------------------------------------------------------- demo


if __name__ == "__main__":
    key = jax.random.PRNGKey(0)
    k1, k2, k3, k4 = jax.random.split(key, 4)

    # Two feature levels (UniNet uses multi-scale features), NCHW, small shapes.
    # Level 2 (8x8 -> L=64) deliberately exercises the L-padding + pad-correction path.
    student_features = [
        jax.random.normal(k1, (2, 4, 16, 16), dtype=jnp.float32),
        jax.random.normal(k2, (2, 8, 8, 8), dtype=jnp.float32),
    ]
    teacher_features = [
        jax.random.normal(k3, (2, 4, 16, 16), dtype=jnp.float32),
        jax.random.normal(k4, (2, 8, 8, 8), dtype=jnp.float32),
    ]

    out = uninet_loss(student_features, teacher_features)
    out = jax.block_until_ready(out)

    ref = jax.block_until_ready(
        _uninet_loss_reference(student_features, teacher_features))

    # Tolerance accounts for bf16 MXU operands in the contrastive row-sum; the cosine
    # term and the diagonal numerator are exact f32, and the divide is exact.
    assert jnp.allclose(out, ref, rtol=5e-3, atol=5e-3), (out, ref)

    print("KERNEL_OK")
</pallas_src>

<mosaic_0001>
module attributes {stable_mosaic.version = 11 : i64} {
  func.func @_uninet_level_kernel(%arg0: i32, %arg1: i32, %arg2: i32, %arg3: memref<1x4x256xf32, #tpu.memory_space<vmem>>, %arg4: memref<1x4x256xf32, #tpu.memory_space<vmem>>, %arg5: memref<1x256x4xbf16, #tpu.memory_space<vmem>>, %arg6: memref<1x3x256xf32, #tpu.memory_space<vmem>>, %arg7: memref<4x256xbf16, #tpu.memory_space<vmem>>, %arg8: memref<1x256xf32, #tpu.memory_space<vmem>>, %arg9: memref<1x256xf32, #tpu.memory_space<vmem>>) attributes {dimension_semantics = [#tpu.dimension_semantics<parallel>, #tpu.dimension_semantics<parallel>, #tpu.dimension_semantics<arbitrary>], iteration_bounds = array<i64: 2, 1, 1>, scalar_prefetch = 0 : i64, scratch_operands = 3 : i64, tpu.core_type = #tpu.core_type<tc>, window_params = [{transform_indices = @transform_0, window_bounds = array<i64: 1, 4, 256>}, {transform_indices = @transform_1, window_bounds = array<i64: 1, 4, 256>}, {transform_indices = @transform_2, window_bounds = array<i64: 1, 256, 4>}, {transform_indices = @transform_3, window_bounds = array<i64: 1, 3, 256>}]} {
    %c0_i32 = arith.constant 0 : i32
    %0 = arith.cmpi eq, %arg2, %c0_i32 : i32
    %1 = arith.extui %0 : i1 to i32
    %c0_i32_0 = arith.constant 0 : i32
    %2 = arith.cmpi ne, %1, %c0_i32_0 : i32
    scf.if %2 {
      %c0_12 = arith.constant 0 : index
      %c0_13 = arith.constant 0 : index
      %c0_14 = arith.constant 0 : index
      %16 = vector.load %arg3[%c0_12, %c0_13, %c0_14] : memref<1x4x256xf32, #tpu.memory_space<vmem>>, vector<1x4x256xf32>
      %17 = vector.shape_cast %16 : vector<1x4x256xf32> to vector<4x256xf32>
      %c0_15 = arith.constant 0 : index
      %c0_16 = arith.constant 0 : index
      %c0_17 = arith.constant 0 : index
      %18 = vector.load %arg4[%c0_15, %c0_16, %c0_17] : memref<1x4x256xf32, #tpu.memory_space<vmem>>, vector<1x4x256xf32>
      %19 = vector.shape_cast %18 : vector<1x4x256xf32> to vector<4x256xf32>
      %20 = arith.mulf %17, %17 : vector<4x256xf32>
      %cst_18 = arith.constant dense<0.000000e+00> : vector<256xf32>
      %21 = vector.multi_reduction <add>, %20, %cst_18 [0] : vector<4x256xf32> to vector<256xf32>
      %22 = vector.shape_cast %21 : vector<256xf32> to vector<1x256xf32>
      %cst_19 = arith.constant 1.000000e-24 : f32
      %23 = vector.broadcast %cst_19 : f32 to vector<1x256xf32>
      %24 = arith.maximumf %22, %23 : vector<1x256xf32>
      %25 = math.rsqrt %24 : vector<1x256xf32>
      %26 = vector.broadcast %25 : vector<1x256xf32> to vector<4x256xf32>
      %27 = arith.mulf %17, %26 : vector<4x256xf32>
      %28 = arith.mulf %19, %19 : vector<4x256xf32>
      %cst_20 = arith.constant dense<0.000000e+00> : vector<256xf32>
      %29 = vector.multi_reduction <add>, %28, %cst_20 [0] : vector<4x256xf32> to vector<256xf32>
      %30 = vector.shape_cast %29 : vector<256xf32> to vector<1x256xf32>
      %cst_21 = arith.constant 1.000000e-24 : f32
      %31 = vector.broadcast %cst_21 : f32 to vector<1x256xf32>
      %32 = arith.maximumf %30, %31 : vector<1x256xf32>
      %33 = math.rsqrt %32 : vector<1x256xf32>
      %34 = vector.broadcast %33 : vector<1x256xf32> to vector<4x256xf32>
      %35 = arith.mulf %19, %34 : vector<4x256xf32>
      %36 = arith.truncf %27 : vector<4x256xf32> to vector<4x256xbf16>
      %c0_22 = arith.constant 0 : index
      %c0_23 = arith.constant 0 : index
      %37 = vector.load %arg7[%c0_22, %c0_23] : memref<4x256xbf16, #tpu.memory_space<vmem>>, vector<4x256xbf16>
      tpu.vector_store %arg7[%c0_22, %c0_23], %36 {strides = array<i32>} : memref<4x256xbf16, #tpu.memory_space<vmem>>, vector<4x256xbf16>,
      %38 = arith.mulf %27, %35 : vector<4x256xf32>
      %cst_24 = arith.constant dense<0.000000e+00> : vector<256xf32>
      %39 = vector.multi_reduction <add>, %38, %cst_24 [0] : vector<4x256xf32> to vector<256xf32>
      %40 = vector.shape_cast %39 : vector<256xf32> to vector<1x256xf32>
      %c0_25 = arith.constant 0 : index
      %c0_26 = arith.constant 0 : index
      %41 = vector.load %arg8[%c0_25, %c0_26] : memref<1x256xf32, #tpu.memory_space<vmem>>, vector<1x256xf32>
      tpu.vector_store %arg8[%c0_25, %c0_26], %40 {strides = array<i32>} : memref<1x256xf32, #tpu.memory_space<vmem>>, vector<1x256xf32>,
      %cst_27 = arith.constant 0.000000e+00 : f32
      %42 = vector.broadcast %cst_27 : f32 to vector<1x256xf32>
      %c0_28 = arith.constant 0 : index
      %c0_29 = arith.constant 0 : index
      %43 = vector.load %arg9[%c0_28, %c0_29] : memref<1x256xf32, #tpu.memory_space<vmem>>, vector<1x256xf32>
      tpu.vector_store %arg9[%c0_28, %c0_29], %42 {strides = array<i32>} : memref<1x256xf32, #tpu.memory_space<vmem>>, vector<1x256xf32>,
    } else {
    }
    %c0 = arith.constant 0 : index
    %c0_1 = arith.constant 0 : index
    %c0_2 = arith.constant 0 : index
    %3 = vector.load %arg5[%c0, %c0_1, %c0_2] : memref<1x256x4xbf16, #tpu.memory_space<vmem>>, vector<1x256x4xbf16>
    %4 = vector.shape_cast %3 : vector<1x256x4xbf16> to vector<256x4xbf16>
    %c0_3 = arith.constant 0 : index
    %c0_4 = arith.constant 0 : index
    %5 = vector.load %arg7[%c0_3, %c0_4] : memref<4x256xbf16, #tpu.memory_space<vmem>>, vector<4x256xbf16>
    %cst = arith.constant dense<0.000000e+00> : vector<256x256xf32>
    %6 = tpu.matmul %4, %5, %cst {dimension_numbers = #tpu.dot_dimension_numbers<[1], [0], [0], [1], [0, 0, 1, 1], [], []>} : vector<256x4xbf16>, vector<4x256xbf16>, vector<256x256xf32> -> vector<256x256xf32>
    %c0_5 = arith.constant 0 : index
    %c0_6 = arith.constant 0 : index
    %7 = vector.load %arg9[%c0_5, %c0_6] : memref<1x256xf32, #tpu.memory_space<vmem>>, vector<1x256xf32>
    %8 = math.exp %6 : vector<256x256xf32>
    %cst_7 = arith.constant dense<0.000000e+00> : vector<256xf32>
    %9 = vector.multi_reduction <add>, %8, %cst_7 [0] : vector<256x256xf32> to vector<256xf32>
    %10 = vector.shape_cast %9 : vector<256xf32> to vector<1x256xf32>
    %11 = arith.addf %7, %10 : vector<1x256xf32>
    %c0_8 = arith.constant 0 : index
    %c0_9 = arith.constant 0 : index
    %12 = vector.load %arg9[%c0_8, %c0_9] : memref<1x256xf32, #tpu.memory_space<vmem>>, vector<1x256xf32>
    tpu.vector_store %arg9[%c0_8, %c0_9], %11 {strides = array<i32>} : memref<1x256xf32, #tpu.memory_space<vmem>>, vector<1x256xf32>,
    %c0_i32_10 = arith.constant 0 : i32
    %13 = arith.cmpi eq, %arg2, %c0_i32_10 : i32
    %14 = arith.extui %13 : i1 to i32
    %c0_i32_11 = arith.constant 0 : i32
    %15 = arith.cmpi ne, %14, %c0_i32_11 : i32
    scf.if %15 {
      %c0_12 = arith.constant 0 : index
      %c0_13 = arith.constant 0 : index
      %16 = vector.load %arg8[%c0_12, %c0_13] : memref<1x256xf32, #tpu.memory_space<vmem>>, vector<1x256xf32>
      %cst_14 = arith.constant 1.000000e+00 : f32
      %17 = vector.broadcast %cst_14 : f32 to vector<1x256xf32>
      %18 = arith.subf %17, %16 : vector<1x256xf32>
      %cst_15 = arith.constant 5.000000e-01 : f32
      %19 = vector.broadcast %cst_15 : f32 to vector<1x256xf32>
      %20 = arith.mulf %16, %19 : vector<1x256xf32>
      %21 = math.exp %20 : vector<1x256xf32>
      %c0_16 = arith.constant 0 : index
      %c0_17 = arith.constant 0 : index
      %22 = vector.load %arg9[%c0_16, %c0_17] : memref<1x256xf32, #tpu.memory_space<vmem>>, vector<1x256xf32>
      %cst_18 = arith.constant 0.000000e+00 : f32
      %23 = vector.broadcast %cst_18 : f32 to vector<1x256xf32>
      %24 = arith.subf %22, %23 : vector<1x256xf32>
      %cst_19 = arith.constant 9.99999993E-9 : f32
      %25 = vector.broadcast %cst_19 : f32 to vector<1x256xf32>
      %26 = arith.addf %24, %25 : vector<1x256xf32>
      %27 = arith.divf %21, %26 : vector<1x256xf32>
      %c0_20 = arith.constant 0 : index
      %c0_21 = arith.constant 0 : index
      %c0_22 = arith.constant 0 : index
      %28 = vector.load %arg6[%c0_20, %c0_21, %c0_22] : memref<1x3x256xf32, #tpu.memory_space<vmem>>, vector<1x1x256xf32>
      %29 = vector.shape_cast %28 : vector<1x1x256xf32> to vector<1x256xf32>
      %30 = vector.shape_cast %18 : vector<1x256xf32> to vector<1x1x256xf32>
      tpu.vector_store %arg6[%c0_20, %c0_21, %c0_22], %30 {strides = array<i32>} : memref<1x3x256xf32, #tpu.memory_space<vmem>>, vector<1x1x256xf32>,
      %cst_23 = arith.constant 9.99999993E-9 : f32
      %31 = vector.broadcast %cst_23 : f32 to vector<1x256xf32>
      %32 = arith.addf %27, %31 : vector<1x256xf32>
      %33 = math.log %32 : vector<1x256xf32>
      %cst_24 = arith.constant 0.000000e+00 : f32
      %34 = vector.broadcast %cst_24 : f32 to vector<1x256xf32>
      %35 = arith.subf %34, %33 : vector<1x256xf32>
      %c0_25 = arith.constant 0 : index
      %c1 = arith.constant 1 : index
      %c0_26 = arith.constant 0 : index
      %36 = vector.load %arg6[%c0_25, %c1, %c0_26] : memref<1x3x256xf32, #tpu.memory_space<vmem>>, vector<1x1x256xf32>
      %37 = vector.shape_cast %36 : vector<1x1x256xf32> to vector<1x256xf32>
      %38 = vector.shape_cast %35 : vector<1x256xf32> to vector<1x1x256xf32>
      tpu.vector_store %arg6[%c0_25, %c1, %c0_26], %38 {strides = array<i32>} : memref<1x3x256xf32, #tpu.memory_space<vmem>>, vector<1x1x256xf32>,
      %cst_27 = arith.constant 1.000000e+00 : f32
      %39 = vector.broadcast %cst_27 : f32 to vector<1x256xf32>
      %40 = arith.subf %39, %27 : vector<1x256xf32>
      %cst_28 = arith.constant 0.000000e+00 : f32
      %41 = vector.broadcast %cst_28 : f32 to vector<1x256xf32>
      %42 = arith.maximumf %40, %41 : vector<1x256xf32>
      %c0_29 = arith.constant 0 : index
      %c2 = arith.constant 2 : index
      %c0_30 = arith.constant 0 : index
      %43 = vector.load %arg6[%c0_29, %c2, %c0_30] : memref<1x3x256xf32, #tpu.memory_space<vmem>>, vector<1x1x256xf32>
      %44 = vector.shape_cast %43 : vector<1x1x256xf32> to vector<1x256xf32>
      %45 = vector.shape_cast %42 : vector<1x256xf32> to vector<1x1x256xf32>
      tpu.vector_store %arg6[%c0_29, %c2, %c0_30], %45 {strides = array<i32>} : memref<1x3x256xf32, #tpu.memory_space<vmem>>, vector<1x1x256xf32>,
    } else {
    }
    return
  }
  func.func @transform_0(%arg0: i32, %arg1: i32, %arg2: i32) -> (i32, i32, i32) {
    %c0_i32 = arith.constant 0 : i32
    %c0_i32_0 = arith.constant 0 : i32
    return %arg0, %c0_i32, %arg1 : i32, i32, i32
  }
  func.func @transform_1(%arg0: i32, %arg1: i32, %arg2: i32) -> (i32, i32, i32) {
    %c0_i32 = arith.constant 0 : i32
    %c0_i32_0 = arith.constant 0 : i32
    return %arg0, %c0_i32, %arg1 : i32, i32, i32
  }
  func.func @transform_2(%arg0: i32, %arg1: i32, %arg2: i32) -> (i32, i32, i32) {
    %c0_i32 = arith.constant 0 : i32
    %c0_i32_0 = arith.constant 0 : i32
    return %arg0, %arg2, %c0_i32 : i32, i32, i32
  }
  func.func @transform_3(%arg0: i32, %arg1: i32, %arg2: i32) -> (i32, i32, i32) {
    %c0_i32 = arith.constant 0 : i32
    %c0_i32_0 = arith.constant 0 : i32
    return %arg0, %c0_i32, %arg1 : i32, i32, i32
  }
}

</mosaic_0001>

<bundles_post_ra>
// kernel: tpu_custom_call.1
= control target key start
LH: loop header
LB: loop body
LE: loop exit
PB: predicated region body
PF: predicated region fallthrough
CT: control target
= control target key end

     0   :  { %s1448_s12 = smov 0   ;;  %s1450_s13 = smov 0   ;;  %s1675_s0 = inlined_call_operand.vmem [shape: f32[2,4,256], index: 0, kind: input, shape index: {}]   ;;  %s1676_s1 = inlined_call_operand.vmem [shape: f32[2,4,256], index: 1, kind: input, shape index: {}]   ;;  %s1677_s2 = inlined_call_operand.vmem [shape: bf16[2,256,4], index: 2, kind: input, shape index: {}]   ;;  %s1678_s3 = inlined_call_operand.vmem [shape: f32[2,3,256], index: 3, kind: output, shape index: {}]  }
   0x1   :  { %s1452_s14 = smov 0  }
   0x2 LB: > { %s32_s15 = sadd.s32 1, %s1419_s13  ;;  %p1161_p0 = scmp.ge.s32.totalorder %s1423_s14, 1  ;;  %s1423_s14 = sphi %s1452_s14, %s13_s14   ;;  %s1419_s13 = sphi %s1450_s13, %s1682_s13   ;;  %s1415_s12 = sphi %s1448_s12, %s1681_s12  }
   0x3   : > { %p34_p1 = scmp.ge.s32.totalorder %s32_s15, 2  ;;  %p199_p2 = scmp.lt.s32.totalorder %s1423_s14, 3 }
   0x5   : > { %s1684_s15 = smov (%p34_p1, %s32_s15), 0  ;;  %p200_p3 = pnand %p1161_p0, %p199_p2 }
   0x6   : > { %p250_p4 = scmp.lt.s32.totalorder (!%p200_p3), %s1415_s12, 1  ;;  %v1425_v0 = vmov (!%p200_p3), 0   ;;  %vm300_vm0 = vcmask (!%p200_p3), 1043456   ;;  %vm581_vm1 = vcmask (!%p200_p3), 1041408   ;;  %vm532_vm2 = vcmask (!%p200_p3), 31744  }
   0x7   : > { %203 = sbr.rel (%p200_p3) target bundleno = 449 (0x1c1), region = 32  ;;  %620 = vmatprep.mubr.bf16.mxu0 (!%p200_p3), %v1425_v0  ;;  %700 = vmatprep.mubr.bf16.mxu1 (!%p200_p3), %v1425_v0 }
   0xe   : > { %s1686_s12 = smov (!%p250_p4, %s1415_s12), 1 }
   0xf   : > { %s1468_s16 = sshll.u32 %s1686_s12, 3  ;;  %s1212_s17 = sshll.u32 %s1686_s12, 7 }
  0x10   : > { %s257_s20 = scalar_lea.vmem %s1675_s0, %s1468_s16  ;;  %s267_s23 = scalar_lea.vmem %s1676_s1, %s1468_s16 }
  0x11   : > { %s1481_s26 = scalar_lea.vmem %s1677_s2, %s1212_s17  ;;  %v294_v1 = vld [vmem:[%s257_s20] sm:$0xff]  ;;  %s1562_s29 = scalar_lea.vmem %s1678_s3, %s1468_s16 }
  0x12   : > { %v295_v2 = vld [vmem:[%s267_s23] sm:$0xff]  ;;  %v296_v3 = vmul.f32 %v294_v1, %v294_v1  ;;  %v1244_v55 = vld [vmem:[%s1481_s26 + $0x8] sm:$0xff]   ;;  %v1245_v57 = vld [vmem:[%s1481_s26 + $0x10] sm:$0xff]  }
  0x13   : > { %v324_v4 = vmul.f32 %v295_v2, %v295_v2  ;;  %v1243_v53 = vld [vmem:[%s1481_s26] sm:$0xff]   ;;  %v1249_v56 = vld [vmem:[%s1481_s26 + $0x48] sm:$0xff]   ;;  %v1251_v58 = vld [vmem:[%s1481_s26 + $0x50] sm:$0xff]  }
  0x14   : > { %v298_v5 = vcombine.high %v296_v3, %v296_v3  ;;  %v301_v6 = vsel %vm300_vm0, %v296_v3, 0.0  ;;  %v1247_v54 = vld [vmem:[%s1481_s26 + $0x40] sm:$0xff]   ;;  %v1246_v59 = vld [vmem:[%s1481_s26 + $0x18] sm:$0xff]   ;;  %v1250_v63 = vld [vmem:[%s1481_s26 + $0x28] sm:$0xff]  }
  0x15   : > { %v326_v7 = vcombine.high %v324_v4, %v324_v4  ;;  %v328_v8 = vsel %vm300_vm0, %v324_v4, 0.0  ;;  %v302_v9 = vrot.slane %v301_v6, 4  ;;  %v1253_v60 = vld [vmem:[%s1481_s26 + $0x58] sm:$0xff]   ;;  %v1248_v61 = vld [vmem:[%s1481_s26 + $0x20] sm:$0xff]   ;;  %v1257_v3 = vld [vmem:[%s1481_s26 + $0x70] sm:$0xff]  }
  0x16   : > { %v329_v10 = vrot.slane %v328_v8, 4  ;;  %v308_v11 = vsel %vm300_vm0, %v298_v5, 0.0  ;;  %v1255_v62 = vld [vmem:[%s1481_s26 + $0x60] sm:$0xff]   ;;  %v1254_v4 = vld [vmem:[%s1481_s26 + $0x38] sm:$0xff]  }
  0x17   : > { %v335_v12 = vsel %vm300_vm0, %v326_v7, 0.0  ;;  %v303_v13 = vadd.f32 %v302_v9, %v301_v6  ;;  %v309_v14 = vrot.slane %v308_v11, 4  ;;  %v1258_v5 = vld [vmem:[%s1481_s26 + $0x78] sm:$0xff]  }
  0x18   : > { %v330_v15 = vadd.f32 %v329_v10, %v328_v8  ;;  %v336_v16 = vrot.slane %v335_v12, 4 }
  0x19   : > { %v304_v17 = vrot.slane %v303_v13, 2  ;;  %v310_v18 = vadd.f32 %v309_v14, %v308_v11 }
  0x1a   : > { %v331_v19 = vrot.slane %v330_v15, 2  ;;  %v337_v20 = vadd.f32 %v336_v16, %v335_v12 }
  0x1b   : > { %v305_v21 = vadd.f32 %v304_v17, %v303_v13  ;;  %v311_v22 = vrot.slane %v310_v18, 2 }
  0x1c   : > { %v332_v23 = vadd.f32 %v331_v19, %v330_v15  ;;  %v338_v24 = vrot.slane %v337_v20, 2  ;;  %v1426_v19 = vmov 1966171168  }
  0x1d   : > { %v306_v25 = vrot.slane %v305_v21, 1  ;;  %v312_v26 = vadd.f32 %v311_v22, %v310_v18 }
  0x1e   : > { %v333_v27 = vrot.slane %v332_v23, 1  ;;  %v339_v28 = vadd.f32 %v338_v24, %v337_v20  ;;  %v390_v20 = vunpack.c.l.s4 %v1426_v19 }
  0x1f   : > { %v307_v29 = vadd.f32 %v306_v25, %v305_v21  ;;  %v313_v30 = vrot.slane %v312_v26, 1 }
  0x20   : > { %v334_v31 = vadd.f32 %v333_v27, %v332_v23  ;;  %v340_v32 = vrot.slane %v339_v28, 1  ;;  %v391_v25 = vunpack.c.0.s8 %v390_v20 }
  0x21   : > { %v314_v33 = vadd.f32 %v313_v30, %v312_v26  ;;  %v315_v34 = vmax.f32 %v307_v29, 1e-24  ;;  %v1427_v26 = vmov 0.0  }
  0x22   : > { %v341_v35 = vadd.f32 %v340_v32, %v339_v28  ;;  %v342_v36 = vmax.f32 %v334_v31, 1e-24 }
  0x23   : > { %v316_v37 = vmax.f32 %v314_v33, 1e-24  ;;  %1259 = vrsqrt.f32 %v315_v34 }
  0x24   : > { %v343_v38 = vmax.f32 %v341_v35, 1e-24  ;;  %1261 = vrsqrt.f32 %v342_v36 }
  0x25   : > { %1263 = vrsqrt.f32 %v316_v37 }
  0x26   : > { %1265 = vrsqrt.f32 %v343_v38 }
  0x2d   : > { %v1260_v39 = vpop.eup %1259 }
  0x2e   : > { %v1262_v40 = vpop.eup %1261 }
  0x2f   : > { %v1264_v41 = vpop.eup %1263 }
  0x30   : > { %v1266_v42 = vpop.eup %1265  ;;  %v321_v43 = vcombine.low %v1260_v39, %v1264_v41 }
  0x31   : > { %v348_v44 = vcombine.low %v1262_v40, %v1266_v42 }
  0x32   : > { %v323_v45 = vmul.f32 %v321_v43, %v294_v1  ;;  %v1256_v1 = vld [vmem:[%s1481_s26 + $0x68] sm:$0xff]  }
  0x33   : > { %v350_v46 = vmul.f32 %v348_v44, %v295_v2  ;;  %v1252_v2 = vld [vmem:[%s1481_s26 + $0x30] sm:$0xff]  }
  0x34   : > { %v352_v47 = vcombine.high %v323_v45, %v323_v45 }
  0x35   : > { %v368_v48 = vmul.f32 %v350_v46, %v323_v45 }
  0x36   : > { %v1170_v49 = vpack.c.bf16 %v352_v47, %v323_v45 }
  0x37   : > { %v370_v6 = vcombine.high %v368_v48, %v368_v48  ;;  %v372_v7 = vsel %vm300_vm0, %v368_v48, 0.0 }
  0x38   : > { %1171 = vst.sshfl [vmem:[#allocation2] sm:$0x33 pattern:$0x76325410] %v1170_v49  ;;  %v373_v8 = vrot.slane %v372_v7, 4 }
  0x39   : > { %v379_v9 = vsel %vm300_vm0, %v370_v6, 0.0 }
  0x3a   : > { %v380_v10 = vrot.slane %v379_v9, 4  ;;  %v374_v11 = vadd.f32 %v373_v8, %v372_v7 }
  0x3c   : > { %v381_v12 = vadd.f32 %v380_v10, %v379_v9  ;;  %v375_v13 = vrot.slane %v374_v11, 2 }
  0x3e   : > { %v382_v14 = vrot.slane %v381_v12, 2  ;;  %v376_v15 = vadd.f32 %v375_v13, %v374_v11 }
  0x3f   : > { %v1188_v50 = vld.sshfl [vmem:[#allocation2] sm:$0x33 pattern:$0x76325410] }
  0x40   : > { %v531_v51 = vcombine.high %v1188_v50, %v1188_v50  ;;  %v583_v52 = vsel %vm581_vm1, %v1188_v50, 0  ;;  %v383_v16 = vadd.f32 %v382_v14, %v381_v12  ;;  %v377_v17 = vrot.slane %v376_v15, 1 }
  0x42   : > { %1189 = vmatprep.subr.msk.bf16.mxu0 %vm581_vm1, %v531_v51  ;;  %1214 = vmatprep.subr.msk.bf16.mxu1 %vm581_vm1, %v531_v51  ;;  %v384_v18 = vrot.slane %v383_v16, 1  ;;  %v378_v23 = vadd.f32 %v377_v17, %v376_v15 }
  0x43   : > { %589 = vmatpush1.bf16.msra.mxu0 %v583_v52  ;;  %1215 = vmatpush1.bf16.msra.mxu1 %v583_v52 }
  0x44   : > { %v385_v24 = vadd.f32 %v384_v18, %v383_v16 }
  0x46   : > { %1190 = vmatmul.mubr.msk.bf16.vlgmr.msra.gmra.mrb[0].mxu0 %vm532_vm2, %v1243_v53  ;;  %1198 = vmatmul.mubr.msk.bf16.vlgmr.msra.gmra.mrb[0].mxu1 %vm532_vm2, %v1247_v54  ;;  %v388_v27 = vcombine.low %v378_v23, %v385_v24 }
  0x47   : > { %630 = vmatprep.mubr.bf16.mxu0 %v1425_v0  ;;  %710 = vmatprep.mubr.bf16.mxu1 %v1425_v0 }
  0x4e   : > { %1191 = vmatmul.mubr.msk.bf16.gmra.mrb[4].mxu0 %vm532_vm2, %v1244_v55  ;;  %1199 = vmatmul.mubr.msk.bf16.gmra.mrb[4].mxu1 %vm532_vm2, %v1249_v56 }
  0x4f   : > { %640 = vmatprep.mubr.bf16.mxu0 %v1425_v0  ;;  %720 = vmatprep.mubr.bf16.mxu1 %v1425_v0 }
  0x56   : > { %1192 = vmatmul.mubr.msk.bf16.gmra.mrb[8].mxu0 %vm532_vm2, %v1245_v57  ;;  %1200 = vmatmul.mubr.msk.bf16.gmra.mrb[8].mxu1 %vm532_vm2, %v1251_v58 }
  0x57   : > { %650 = vmatprep.mubr.bf16.mxu0 %v1425_v0  ;;  %730 = vmatprep.mubr.bf16.mxu1 %v1425_v0 }
  0x5e   : > { %1193 = vmatmul.mubr.msk.bf16.gmra.mrb[12].mxu0 %vm532_vm2, %v1246_v59  ;;  %1201 = vmatmul.mubr.msk.bf16.gmra.mrb[12].mxu1 %vm532_vm2, %v1253_v60 }
  0x5f   : > { %660 = vmatprep.mubr.bf16.mxu0 %v1425_v0  ;;  %740 = vmatprep.mubr.bf16.mxu1 %v1425_v0 }
  0x66   : > { %1194 = vmatmul.mubr.msk.bf16.gmra.mrb[16].mxu0 %vm532_vm2, %v1248_v61  ;;  %1202 = vmatmul.mubr.msk.bf16.gmra.mrb[16].mxu1 %vm532_vm2, %v1255_v62 }
  0x67   : > { %670 = vmatprep.mubr.bf16.mxu0 %v1425_v0  ;;  %750 = vmatprep.mubr.bf16.mxu1 %v1425_v0 }
  0x6e   : > { %1195 = vmatmul.mubr.msk.bf16.gmra.mrb[20].mxu0 %vm532_vm2, %v1250_v63  ;;  %1203 = vmatmul.mubr.msk.bf16.gmra.mrb[20].mxu1 %vm532_vm2, %v1256_v1 }
  0x6f   : > { %680 = vmatprep.mubr.bf16.mxu0 %v1425_v0  ;;  %760 = vmatprep.mubr.bf16.mxu1 %v1425_v0 }
  0x76   : > { %1196 = vmatmul.mubr.msk.bf16.gmra.mrb[24].mxu0 %vm532_vm2, %v1252_v2  ;;  %1204 = vmatmul.mubr.msk.bf16.gmra.mrb[24].mxu1 %vm532_vm2, %v1257_v3 }
  0x77   : > { %690 = vmatprep.mubr.bf16.mxu0 %v1425_v0  ;;  %770 = vmatprep.mubr.bf16.mxu1 %v1425_v0  ;;  %v392_v0 = vlaneseq }
  0x79   : > { %v393_v21 = vshrl.u32 %v392_v0, 7  ;;  %vm1535_vm3 = vcmp.lt.s32.totalorder %v392_v0, 256 }
  0x7a   : > { %409 = vst.msk [vmem:[#allocation4] sm:$0x3] %vm1535_vm3, %v1427_v26 }
  0x7b   : > { %v1541_v28 = vsub.s32 %v391_v25, %v393_v21 }
  0x7d   : > { %v395_v29 = vrot.slane %v388_v27, %v1541_v28 }
  0x7e   : > { %1197 = vmatmul.mubr.msk.bf16.gmra.mrb[28].mxu0 %vm532_vm2, %v1254_v4  ;;  %1205 = vmatmul.mubr.msk.bf16.gmra.mrb[28].mxu1 %vm532_vm2, %v1258_v5 }
  0x7f   : > { %v402_v30 = vrot.slane %v395_v29, %v1541_v28 }
  0x81   : > { %408 = vst.msk [vmem:[#allocation3] sm:$0x3] %vm1535_vm3, %v402_v30 }
  0x88   : > { %v1555_v43 = vld [vmem:[#allocation3] sm:$0x3] }
  0x89   : > { %v1012_v44 = vsub.f32 1.0, %v1555_v43 }
  0x8b   : > { %1020 = vst.msk [vmem:[%s1562_s29] ss:$4 sm:$0x3] %vm1535_vm3, %v1012_v44 }
 0x119   : > { %v622_v31 = vpop.f32.mrb[0].mxu0  ;;  %v1547_v32 = vpop.f32.mrb[0].mxu1 }
 0x11a   : > { %v782_v33 = vmul.f32 1.442695, %v622_v31  ;;  %v624_v34 = vpop.f32.mrb[1].mxu0  ;;  %v1549_v35 = vpop.f32.mrb[1].mxu1 }
 0x11b   : > { %v784_v36 = vmul.f32 1.442695, %v624_v34  ;;  %v626_v37 = vpop.f32.mrb[2].mxu0  ;;  %v1551_v38 = vpop.f32.mrb[2].mxu1 }
 0x11c   : > { %1267 = vpow2.f32 %v782_v33  ;;  %v786_v39 = vmul.f32 1.442695, %v626_v37  ;;  %v628_v40 = vpop.f32.mrb[3].mxu0  ;;  %v1553_v41 = vpop.f32.mrb[3].mxu1 }
 0x11d   : > { %1269 = vpow2.f32 %v784_v36  ;;  %v788_v42 = vmul.f32 1.442695, %v628_v40 }
 0x11e   : > { %1271 = vpow2.f32 %v786_v39 }
 0x11f   : > { %1273 = vpow2.f32 %v788_v42 }
 0x121   : > { %v632_v45 = vpop.f32.mrb[4].mxu0  ;;  %v1567_v46 = vpop.f32.mrb[4].mxu1 }
 0x122   : > { %v790_v47 = vmul.f32 1.442695, %v632_v45  ;;  %v634_v48 = vpop.f32.mrb[5].mxu0  ;;  %v1569_v49 = vpop.f32.mrb[5].mxu1 }
 0x123   : > { %v792_v50 = vmul.f32 1.442695, %v634_v48  ;;  %v636_v51 = vpop.f32.mrb[6].mxu0  ;;  %v1571_v52 = vpop.f32.mrb[6].mxu1 }
 0x124   : > { %1275 = vpow2.f32 %v790_v47  ;;  %v794_v53 = vmul.f32 1.442695, %v636_v51  ;;  %v638_v54 = vpop.f32.mrb[7].mxu0  ;;  %v1573_v55 = vpop.f32.mrb[7].mxu1 }
 0x125   : > { %1277 = vpow2.f32 %v792_v50  ;;  %v796_v56 = vmul.f32 1.442695, %v638_v54 }
 0x126   : > { %v1268_v57 = vpop.eup %1267  ;;  %1279 = vpow2.f32 %v794_v53 }
 0x127   : > { %v1270_v58 = vpop.eup %1269  ;;  %1281 = vpow2.f32 %v796_v56 }
 0x128   : > { %v1272_v59 = vpop.eup %1271 }
 0x129   : > { %v1274_v60 = vpop.eup %1273  ;;  %v910_v61 = vadd.f32 %v1272_v59, %v1268_v57  ;;  %v642_v62 = vpop.f32.mrb[8].mxu0 }
 0x12a   : > { %v1575_v63 = vpop.f32.mrb[8].mxu1  ;;  %v947_v1 = vadd.f32 %v1274_v60, %v1270_v58  ;;  %v798_v2 = vmul.f32 1.442695, %v642_v62  ;;  %v644_v3 = vpop.f32.mrb[9].mxu0 }
 0x12b   : > { %v1577_v4 = vpop.f32.mrb[9].mxu1  ;;  %v800_v5 = vmul.f32 1.442695, %v644_v3  ;;  %v646_v6 = vpop.f32.mrb[10].mxu0 }
 0x12c   : > { %v1579_v7 = vpop.f32.mrb[10].mxu1  ;;  %1283 = vpow2.f32 %v798_v2  ;;  %v802_v8 = vmul.f32 1.442695, %v646_v6  ;;  %v648_v9 = vpop.f32.mrb[11].mxu0 }
 0x12d   : > { %v1581_v10 = vpop.f32.mrb[11].mxu1  ;;  %1285 = vpow2.f32 %v800_v5  ;;  %v804_v11 = vmul.f32 1.442695, %v648_v9 }
 0x12e   : > { %v1276_v12 = vpop.eup %1275  ;;  %1287 = vpow2.f32 %v802_v8 }
 0x12f   : > { %v1278_v13 = vpop.eup %1277  ;;  %v911_v14 = vadd.f32 %v1276_v12, %v910_v61  ;;  %1289 = vpow2.f32 %v804_v11 }
 0x130   : > { %v1280_v15 = vpop.eup %1279  ;;  %v948_v16 = vadd.f32 %v1278_v13, %v947_v1 }
 0x131   : > { %v1282_v0 = vpop.eup %1281  ;;  %v912_v17 = vadd.f32 %v1280_v15, %v911_v14  ;;  %v652_v18 = vpop.f32.mrb[12].mxu0 }
 0x132   : > { %v1583_v19 = vpop.f32.mrb[12].mxu1  ;;  %v949_v20 = vadd.f32 %v1282_v0, %v948_v16  ;;  %v806_v21 = vmul.f32 1.442695, %v652_v18  ;;  %v654_v23 = vpop.f32.mrb[13].mxu0 }
 0x133   : > { %v1585_v24 = vpop.f32.mrb[13].mxu1  ;;  %v808_v25 = vmul.f32 1.442695, %v654_v23  ;;  %v656_v26 = vpop.f32.mrb[14].mxu0 }
 0x134   : > { %v1587_v27 = vpop.f32.mrb[14].mxu1  ;;  %1291 = vpow2.f32 %v806_v21  ;;  %v810_v29 = vmul.f32 1.442695, %v656_v26  ;;  %v658_v30 = vpop.f32.mrb[15].mxu0 }
 0x135   : > { %v1589_v31 = vpop.f32.mrb[15].mxu1  ;;  %1293 = vpow2.f32 %v808_v25  ;;  %v812_v33 = vmul.f32 1.442695, %v658_v30 }
 0x136   : > { %v1284_v34 = vpop.eup %1283  ;;  %1295 = vpow2.f32 %v810_v29 }
 0x137   : > { %v1286_v36 = vpop.eup %1285  ;;  %v913_v37 = vadd.f32 %v1284_v34, %v912_v17  ;;  %1297 = vpow2.f32 %v812_v33 }
 0x138   : > { %v1288_v39 = vpop.eup %1287  ;;  %v950_v40 = vadd.f32 %v1286_v36, %v949_v20 }
 0x139   : > { %v1290_v42 = vpop.eup %1289  ;;  %v914_v44 = vadd.f32 %v1288_v39, %v913_v37  ;;  %v662_v45 = vpop.f32.mrb[16].mxu0 }
 0x13a   : > { %v1591_v47 = vpop.f32.mrb[16].mxu1  ;;  %v951_v48 = vadd.f32 %v1290_v42, %v950_v40  ;;  %v814_v50 = vmul.f32 1.442695, %v662_v45  ;;  %v664_v51 = vpop.f32.mrb[17].mxu0 }
 0x13b   : > { %v1593_v53 = vpop.f32.mrb[17].mxu1  ;;  %v816_v54 = vmul.f32 1.442695, %v664_v51  ;;  %v666_v56 = vpop.f32.mrb[18].mxu0 }
 0x13c   : > { %v1595_v57 = vpop.f32.mrb[18].mxu1  ;;  %1299 = vpow2.f32 %v814_v50  ;;  %v818_v58 = vmul.f32 1.442695, %v666_v56  ;;  %v668_v59 = vpop.f32.mrb[19].mxu0 }
 0x13d   : > { %v1597_v60 = vpop.f32.mrb[19].mxu1  ;;  %1301 = vpow2.f32 %v816_v54  ;;  %v820_v61 = vmul.f32 1.442695, %v668_v59 }
 0x13e   : > { %v1292_v62 = vpop.eup %1291  ;;  %1303 = vpow2.f32 %v818_v58 }
 0x13f   : > { %v1294_v1 = vpop.eup %1293  ;;  %v915_v2 = vadd.f32 %v1292_v62, %v914_v44  ;;  %1305 = vpow2.f32 %v820_v61  ;;  %v846_v62 = vmul.f32 1.442695, %v1547_v32 }
 0x140   : > { %v1296_v3 = vpop.eup %1295  ;;  %v952_v5 = vadd.f32 %v1294_v1, %v951_v48 }
 0x141   : > { %v1298_v6 = vpop.eup %1297  ;;  %v916_v8 = vadd.f32 %v1296_v3, %v915_v2  ;;  %v672_v9 = vpop.f32.mrb[20].mxu0  ;;  %v848_v2 = vmul.f32 1.442695, %v1549_v35  ;;  %v850_v35 = vmul.f32 1.442695, %v1551_v38 }
 0x142   : > { %v1599_v11 = vpop.f32.mrb[20].mxu1  ;;  %v953_v12 = vadd.f32 %v1298_v6, %v952_v5  ;;  %v822_v13 = vmul.f32 1.442695, %v672_v9  ;;  %v674_v14 = vpop.f32.mrb[21].mxu0  ;;  %v858_v38 = vmul.f32 1.442695, %v1571_v52 }
 0x143   : > { %v1601_v15 = vpop.f32.mrb[21].mxu1  ;;  %v824_v16 = vmul.f32 1.442695, %v674_v14  ;;  %v676_v0 = vpop.f32.mrb[22].mxu0  ;;  %v868_v52 = vmul.f32 1.442695, %v1581_v10 }
 0x144   : > { %v1603_v17 = vpop.f32.mrb[22].mxu1  ;;  %1307 = vpow2.f32 %v822_v13  ;;  %v826_v18 = vmul.f32 1.442695, %v676_v0  ;;  %v678_v20 = vpop.f32.mrb[23].mxu0 }
 0x145   : > { %v1605_v21 = vpop.f32.mrb[23].mxu1  ;;  %1309 = vpow2.f32 %v824_v16  ;;  %v828_v23 = vmul.f32 1.442695, %v678_v20 }
 0x146   : > { %v1300_v25 = vpop.eup %1299  ;;  %1311 = vpow2.f32 %v826_v18 }
 0x147   : > { %v1302_v26 = vpop.eup %1301  ;;  %v917_v29 = vadd.f32 %v1300_v25, %v916_v8  ;;  %1313 = vpow2.f32 %v828_v23 }
 0x148   : > { %v1304_v30 = vpop.eup %1303  ;;  %v954_v33 = vadd.f32 %v1302_v26, %v953_v12 }
 0x149   : > { %v1306_v34 = vpop.eup %1305  ;;  %v918_v36 = vadd.f32 %v1304_v30, %v917_v29  ;;  %v682_v37 = vpop.f32.mrb[24].mxu0  ;;  %v852_v30 = vmul.f32 1.442695, %v1553_v41  ;;  %v860_v41 = vmul.f32 1.442695, %v1573_v55 }
 0x14a   : > { %v1607_v39 = vpop.f32.mrb[24].mxu1  ;;  %v955_v40 = vadd.f32 %v1306_v34, %v954_v33  ;;  %v830_v42 = vmul.f32 1.442695, %v682_v37  ;;  %v684_v44 = vpop.f32.mrb[25].mxu0  ;;  %v870_v55 = vmul.f32 1.442695, %v1583_v19 }
 0x14b   : > { %v1609_v45 = vpop.f32.mrb[25].mxu1  ;;  %v832_v48 = vmul.f32 1.442695, %v684_v44  ;;  %v686_v50 = vpop.f32.mrb[26].mxu0  ;;  %v878_v19 = vmul.f32 1.442695, %v1591_v47 }
 0x14c   : > { %v1611_v51 = vpop.f32.mrb[26].mxu1  ;;  %1315 = vpow2.f32 %v830_v42  ;;  %v834_v54 = vmul.f32 1.442695, %v686_v50  ;;  %v688_v56 = vpop.f32.mrb[27].mxu0  ;;  %v886_v47 = vmul.f32 1.442695, %v1599_v11 }
 0x14d   : > { %v1613_v58 = vpop.f32.mrb[27].mxu1  ;;  %1317 = vpow2.f32 %v832_v48  ;;  %v836_v59 = vmul.f32 1.442695, %v688_v56  ;;  %v862_v56 = vmul.f32 1.442695, %v1575_v63 }
 0x14e   : > { %v1308_v61 = vpop.eup %1307  ;;  %1319 = vpow2.f32 %v834_v54  ;;  %v872_v63 = vmul.f32 1.442695, %v1585_v24  ;;  %v880_v24 = vmul.f32 1.442695, %v1593_v53  ;;  %v888_v53 = vmul.f32 1.442695, %v1601_v15 }
 0x14f   : > { %v1310_v1 = vpop.eup %1309  ;;  %v919_v3 = vadd.f32 %v1308_v61, %v918_v36  ;;  %1321 = vpow2.f32 %v836_v59  ;;  %v854_v36 = vmul.f32 1.442695, %v1567_v46  ;;  %v864_v59 = vmul.f32 1.442695, %v1577_v4 }
 0x150   : > { %v1312_v5 = vpop.eup %1311  ;;  %v956_v6 = vadd.f32 %v1310_v1, %v955_v40  ;;  %1323 = vpow2.f32 %v846_v62  ;;  %v856_v40 = vmul.f32 1.442695, %v1569_v49  ;;  %v866_v61 = vmul.f32 1.442695, %v1579_v7 }
 0x151   : > { %v1314_v8 = vpop.eup %1313  ;;  %v920_v9 = vadd.f32 %v1312_v5, %v919_v3  ;;  %v692_v12 = vpop.f32.mrb[28].mxu0  ;;  %1325 = vpow2.f32 %v848_v2  ;;  %v874_v4 = vmul.f32 1.442695, %v1587_v27  ;;  %v876_v7 = vmul.f32 1.442695, %v1589_v31 }
 0x152   : > { %v1617_v13 = vpop.f32.mrb[28].mxu1  ;;  %v957_v14 = vadd.f32 %v1314_v8, %v956_v6  ;;  %v838_v16 = vmul.f32 1.442695, %v692_v12  ;;  %v694_v0 = vpop.f32.mrb[29].mxu0  ;;  %v882_v27 = vmul.f32 1.442695, %v1595_v57 }
 0x153   : > { %v1619_v18 = vpop.f32.mrb[29].mxu1  ;;  %v840_v32 = vmul.f32 1.442695, %v694_v0  ;;  %v696_v20 = vpop.f32.mrb[30].mxu0  ;;  %v884_v31 = vmul.f32 1.442695, %v1597_v60 }
 0x154   : > { %v1621_v23 = vpop.f32.mrb[30].mxu1  ;;  %1327 = vpow2.f32 %v838_v16  ;;  %v842_v25 = vmul.f32 1.442695, %v696_v20  ;;  %v698_v26 = vpop.f32.mrb[31].mxu0  ;;  %v890_v57 = vmul.f32 1.442695, %v1603_v17 }
 0x155   : > { %v1624_v29 = vpop.f32.mrb[31].mxu1  ;;  %1329 = vpow2.f32 %v840_v32  ;;  %v844_v33 = vmul.f32 1.442695, %v698_v26  ;;  %v892_v60 = vmul.f32 1.442695, %v1605_v21 }
 0x156   : > { %v1316_v34 = vpop.eup %1315  ;;  %1331 = vpow2.f32 %v842_v25  ;;  %v894_v11 = vmul.f32 1.442695, %v1607_v39  ;;  %v896_v15 = vmul.f32 1.442695, %v1609_v45  ;;  %v898_v17 = vmul.f32 1.442695, %v1611_v51 }
 0x157   : > { %v1318_v37 = vpop.eup %1317  ;;  %v921_v42 = vadd.f32 %v1316_v34, %v920_v9  ;;  %1333 = vpow2.f32 %v844_v33  ;;  %v900_v21 = vmul.f32 1.442695, %v1613_v58  ;;  %v902_v39 = vmul.f32 1.442695, %v1617_v13 }
 0x158   : > { %v1320_v44 = vpop.eup %1319  ;;  %1335 = vpow2.f32 %v850_v35  ;;  %v958_v48 = vadd.f32 %v1318_v37, %v957_v14  ;;  %v904_v45 = vmul.f32 1.442695, %v1619_v18  ;;  %v906_v58 = vmul.f32 1.442695, %v1621_v23 }
 0x159   : > { %v1322_v50 = vpop.eup %1321  ;;  %1337 = vpow2.f32 %v852_v30  ;;  %v922_v54 = vadd.f32 %v1320_v44, %v921_v42  ;;  %v908_v13 = vmul.f32 1.442695, %v1624_v29 }
 0x15a   : > { %1339 = vpow2.f32 %v854_v36  ;;  %v959_v46 = vadd.f32 %v1322_v50, %v958_v48  ;;  %v1324_v49 = vpop.eup %1323 }
 0x15b   : > { %1341 = vpow2.f32 %v856_v40  ;;  %v1326_v62 = vpop.eup %1325 }
 0x15c   : > { %1343 = vpow2.f32 %v858_v38 }
 0x15d   : > { %1345 = vpow2.f32 %v860_v41 }
 0x15e   : > { %v1328_v1 = vpop.eup %1327  ;;  %1347 = vpow2.f32 %v862_v56 }
 0x15f   : > { %v1330_v2 = vpop.eup %1329  ;;  %1349 = vpow2.f32 %v864_v59  ;;  %v923_v3 = vadd.f32 %v1328_v1, %v922_v54 }
 0x160   : > { %v1332_v5 = vpop.eup %1331  ;;  %1351 = vpow2.f32 %v866_v61  ;;  %v960_v6 = vadd.f32 %v1330_v2, %v959_v46 }
 0x161   : > { %v1334_v8 = vpop.eup %1333  ;;  %1353 = vpow2.f32 %v868_v52  ;;  %v924_v9 = vadd.f32 %v1332_v5, %v923_v3 }
 0x162   : > { %v1336_v10 = vpop.eup %1335  ;;  %1355 = vpow2.f32 %v870_v55  ;;  %v961_v12 = vadd.f32 %v1334_v8, %v960_v6 }
 0x163   : > { %v1338_v14 = vpop.eup %1337  ;;  %1357 = vpow2.f32 %v872_v63  ;;  %v925_v16 = vadd.f32 %v1324_v49, %v924_v9 }
 0x164   : > { %v1340_v0 = vpop.eup %1339  ;;  %1359 = vpow2.f32 %v874_v4  ;;  %v962_v32 = vadd.f32 %v1326_v62, %v961_v12 }
 0x165   : > { %v1342_v20 = vpop.eup %1341  ;;  %1361 = vpow2.f32 %v876_v7  ;;  %v926_v35 = vadd.f32 %v1336_v10, %v925_v16 }
 0x166   : > { %v1344_v25 = vpop.eup %1343  ;;  %v963_v26 = vadd.f32 %v1338_v14, %v962_v32  ;;  %1363 = vpow2.f32 %v878_v19 }
 0x167   : > { %v1346_v30 = vpop.eup %1345  ;;  %v927_v33 = vadd.f32 %v1340_v0, %v926_v35  ;;  %1365 = vpow2.f32 %v880_v24 }
 0x168   : > { %v1348_v34 = vpop.eup %1347  ;;  %v964_v36 = vadd.f32 %v1342_v20, %v963_v26  ;;  %1367 = vpow2.f32 %v882_v27 }
 0x169   : > { %v1350_v37 = vpop.eup %1349  ;;  %v928_v40 = vadd.f32 %v1344_v25, %v927_v33  ;;  %1369 = vpow2.f32 %v884_v31 }
 0x16a   : > { %v1352_v42 = vpop.eup %1351  ;;  %v965_v44 = vadd.f32 %v1346_v30, %v964_v36  ;;  %1371 = vpow2.f32 %v886_v47 }
 0x16b   : > { %v1354_v38 = vpop.eup %1353  ;;  %v929_v48 = vadd.f32 %v1348_v34, %v928_v40  ;;  %1373 = vpow2.f32 %v888_v53 }
 0x16c   : > { %v1356_v50 = vpop.eup %1355  ;;  %v966_v41 = vadd.f32 %v1350_v37, %v965_v44  ;;  %1375 = vpow2.f32 %v890_v57 }
 0x16d   : > { %v1358_v54 = vpop.eup %1357  ;;  %v930_v56 = vadd.f32 %v1352_v42, %v929_v48  ;;  %1377 = vpow2.f32 %v892_v60 }
 0x16e   : > { %v1360_v46 = vpop.eup %1359  ;;  %v967_v59 = vadd.f32 %v1354_v38, %v966_v41  ;;  %1379 = vpow2.f32 %v894_v11 }
 0x16f   : > { %v1362_v49 = vpop.eup %1361  ;;  %v931_v61 = vadd.f32 %v1356_v50, %v930_v56  ;;  %1381 = vpow2.f32 %v896_v15 }
 0x170   : > { %v1364_v62 = vpop.eup %1363  ;;  %v968_v52 = vadd.f32 %v1358_v54, %v967_v59  ;;  %1383 = vpow2.f32 %v898_v17  ;;  %v781_v17 = vld [vmem:[#allocation4] sm:$0x3] }
 0x171   : > { %v1366_v1 = vpop.eup %1365  ;;  %v932_v51 = vadd.f32 %v1360_v46, %v931_v61  ;;  %1385 = vpow2.f32 %v900_v21  ;;  %v1013_v21 = vmul.f32 0.5, %v1555_v43 }
 0x172   : > { %v1368_v55 = vpop.eup %1367  ;;  %v969_v2 = vadd.f32 %v1362_v49, %v968_v52  ;;  %1387 = vpow2.f32 %v902_v39 }
 0x173   : > { %v1370_v63 = vpop.eup %1369  ;;  %v933_v3 = vadd.f32 %v1364_v62, %v932_v51  ;;  %1389 = vpow2.f32 %v904_v45  ;;  %v1014_v46 = vmul.f32 1.442695, %v1013_v21 }
 0x174   : > { %v1372_v5 = vpop.eup %1371  ;;  %v970_v4 = vadd.f32 %v1366_v1, %v969_v2  ;;  %1391 = vpow2.f32 %v906_v58 }
 0x175   : > { %v1374_v6 = vpop.eup %1373  ;;  %v934_v18 = vadd.f32 %v1368_v55, %v933_v3  ;;  %1393 = vpow2.f32 %v908_v13 }
 0x176   : > { %v1376_v8 = vpop.eup %1375  ;;  %v971_v7 = vadd.f32 %v1370_v63, %v970_v4  ;;  %1395 = vpow2.f32 %v1014_v46 }
 0x177   : > { %v1378_v9 = vpop.eup %1377  ;;  %v935_v10 = vadd.f32 %v1372_v5, %v934_v18 }
 0x178   : > { %v1380_v12 = vpop.eup %1379  ;;  %v972_v19 = vadd.f32 %v1374_v6, %v971_v7 }
 0x179   : > { %v1382_v14 = vpop.eup %1381  ;;  %v936_v16 = vadd.f32 %v1376_v8, %v935_v10 }
 0x17a   : > { %v1384_v23 = vpop.eup %1383  ;;  %v973_v24 = vadd.f32 %v1378_v9, %v972_v19 }
 0x17b   : > { %v1386_v0 = vpop.eup %1385  ;;  %v937_v32 = vadd.f32 %v1380_v12, %v936_v16 }
 0x17c   : > { %v1388_v27 = vpop.eup %1387  ;;  %v974_v29 = vadd.f32 %v1382_v14, %v973_v24 }
 0x17d   : > { %v1390_v20 = vpop.eup %1389  ;;  %v938_v35 = vadd.f32 %v1384_v23, %v937_v32 }
 0x17e   : > { %v975_v31 = vadd.f32 %v1386_v0, %v974_v29  ;;  %v1392_v26 = vpop.eup %1391 }
 0x17f   : > { %v939_v25 = vadd.f32 %v1388_v27, %v938_v35  ;;  %v1394_v30 = vpop.eup %1393 }
 0x180   : > { %v976_v47 = vadd.f32 %v1390_v20, %v975_v31  ;;  %v1396_v49 = vpop.eup %1395 }
 0x181   : > { %v940_v33 = vadd.f32 %v1392_v26, %v939_v25 }
 0x182   : > { %v977_v53 = vadd.f32 %v1394_v30, %v976_v47 }
 0x183   : > { %v941_v34 = vrot.slane %v940_v33, 4 }
 0x184   : > { %v978_v36 = vrot.slane %v977_v53, 4 }
 0x185   : > { %v942_v57 = vadd.f32 %v941_v34, %v940_v33 }
 0x186   : > { %v979_v37 = vadd.f32 %v978_v36, %v977_v53 }
 0x187   : > { %v943_v40 = vrot.slane %v942_v57, 2 }
 0x188   : > { %v980_v60 = vrot.slane %v979_v37, 2 }
 0x189   : > { %v944_v42 = vadd.f32 %v943_v40, %v942_v57 }
 0x18a   : > { %v981_v44 = vadd.f32 %v980_v60, %v979_v37 }
 0x18b   : > { %v945_v11 = vrot.slane %v944_v42, 1 }
 0x18c   : > { %v982_v38 = vrot.slane %v981_v44, 1 }
 0x18d   : > { %v946_v48 = vadd.f32 %v945_v11, %v944_v42 }
 0x18e   : > { %v983_v15 = vadd.f32 %v982_v38, %v981_v44 }
 0x190   : > { %v986_v50 = vcombine.low %v946_v48, %v983_v15 }
 0x192   : > { %v993_v41 = vrot.slane %v986_v50, %v1541_v28 }
 0x194   : > { %v1000_v54 = vrot.slane %v993_v41, %v1541_v28 }
 0x196   : > { %v1002_v56 = vadd.f32 %v1000_v54, %v781_v17 }
 0x198   : > { %1007 = vst.msk [vmem:[#allocation4] sm:$0x3] %vm1535_vm3, %v1002_v56 }
 0x19f   : > { %v1016_v59 = vld [vmem:[#allocation4] sm:$0x3] }
 0x1a0   : > { %v1017_v39 = vadd.f32 1e-08, %v1016_v59 }
 0x1a2   : > { %1397 = vrcp.f32 %v1017_v39 }
 0x1ac   : > { %v1398_v61 = vpop.eup %1397 }
 0x1ad   : > { %v1019_v45 = vmul.f32 %v1398_v61, %v1396_v49 }
 0x1af   : > { %v1021_v62 = vadd.f32 1e-08, %v1019_v45  ;;  %v1027_v52 = vsub.f32 1.0, %v1019_v45 }
 0x1b1   : > { %1399 = vlog2.f32 %v1021_v62  ;;  %v1028_v28 = vmax.f32 %v1027_v52, 0.0 }
 0x1b3   : > { %1207 = vst.msk [vmem:[%s1562_s29 + $0x2] ss:$4 sm:$0x3] %vm1535_vm3, %v1028_v28 }
 0x1bb   : > { %v1400_v1 = vpop.eup %1399 }
 0x1bc   : > { %v1023_v51 = vmul.f32 0.6931472, %v1400_v1 }
 0x1be   : > { %v1024_v55 = vsub.f32 0.0, %v1023_v51 }
 0x1c0   : > { %1206 = vst.msk [vmem:[%s1562_s29 + $0x1] ss:$4 sm:$0x3] %vm1535_vm3, %v1024_v55 }
 0x1c1 PF: > { %s13_s14 = sadd.s32 1, %s1423_s14   ;;  %s1681_s12 = smov %s1419_s13 }
 0x1c2   : > { %p10_p5 = scmp.ge.s32.totalorder %s13_s14, 4   ;;  %s1682_s13 = smov %s1684_s15 }
 0x1c4   :  { %12 = sbr.rel (!%p10_p5) target bundleno = 2 (0x2), region = 78 }

</bundles_post_ra>
